<compile_context>
chip_gen: v7x
topology: tpu7x:2x2x1
jax: 0.10.0
libtpu: 0.0.40
codegen_flags: <defaults>
</compile_context>

<pallas_src>
import functools

import jax
import jax.numpy as jnp
from jax.experimental import pallas as pl
from jax.experimental.pallas import tpu as pltpu


def _round_up(x: int, m: int) -> int:
    return ((x + m - 1) // m) * m


# ---------------------------------------------------------------------------
# Kernel: processes TILE_M flattened token rows per grid step.
#   ids_ref   (TILE_M, 1)   int32    (-1 == padded / masked position)
#   fused_ref (Vp, Hp)      bfloat16 (zero-padded fused emb@W table)
#   b_ref     (1, Hp)       float32  (zero-padded projection bias)
#   o_ref     (TILE_M, Hp)  out_dtype (lane-dense output slab)
# ---------------------------------------------------------------------------
def _backbone_rows_kernel(ids_ref, fused_ref, b_ref, o_ref, *, normalize, eps):
    tm = ids_ref.shape[0]
    vp = fused_ref.shape[0]

    ids = ids_ref[...]                                   # (TM, 1) int32
    # Mask recomputed from the sentinel ids (no separate mask stream).
    valid = (ids >= 0).astype(jnp.float32)               # (TM, 1) f32

    # Embedding lookup + projection as a single one-hot matmul on the MXU.
    # one_hot rows are exact {0,1} in bf16, so the f32-accumulated dot selects
    # the bf16 fused-table row exactly.
    iota_v = jax.lax.broadcasted_iota(jnp.int32, (tm, vp), 1)
    one_hot = (ids == iota_v).astype(jnp.bfloat16)       # direct bool->bf16
    h = jnp.dot(one_hot, fused_ref[...],
                preferred_element_type=jnp.float32)      # (TM, Hp) f32
    h = h + b_ref[...]                                   # broadcast (1, Hp)
    h = h * valid                                        # zero padded positions

    if normalize:
        # torch.nn.functional.normalize(p=2, dim=-1): x / max(||x||_2, eps)
        # == x * rsqrt(max(sum(x^2), eps^2))   (sqrt is monotone)
        sumsq = jnp.sum(h * h, axis=-1, keepdims=True)
        h = h * jax.lax.rsqrt(jnp.maximum(sumsq, eps * eps))

    o_ref[...] = h.astype(o_ref.dtype)


def _run_backbone_rows(ids_col, fused_p, b_p, *, normalize, tile_m, out_dtype,
                       eps=1e-12):
    """Run the synthetic backbone on a flat, tile-padded column of token ids."""
    n_pad = ids_col.shape[0]
    vp, hp = fused_p.shape
    assert n_pad % tile_m == 0

    kernel = functools.partial(_backbone_rows_kernel,
                               normalize=normalize, eps=eps)

    return pl.pallas_call(
        kernel,
        out_shape=jax.ShapeDtypeStruct((n_pad, hp), out_dtype),
        grid_spec=pltpu.PrefetchScalarGridSpec(
            num_scalar_prefetch=0,
            grid=(n_pad // tile_m,),
            in_specs=[
                pl.BlockSpec((tile_m, 1), lambda i: (i, 0)),   # token ids
                pl.BlockSpec((vp, hp), lambda i: (0, 0)),      # fused table
                pl.BlockSpec((1, hp), lambda i: (0, 0)),       # proj bias
            ],
            out_specs=pl.BlockSpec((tile_m, hp), lambda i: (i, 0)),
        ),
        compiler_params=pltpu.CompilerParams(
            dimension_semantics=("parallel",),
            vmem_limit_bytes=32 * 1024 * 1024),
    )(ids_col, fused_p, b_p)


def backbone_pair_embedding_extraction(
        ligand_input_ids, receptor_input_ids,
        ligand_attention_mask=None, receptor_attention_mask=None,
        *, emb_table, proj_w, proj_b, normalize=False, tile_m=1024,
        out_dtype=jnp.float32, eps=1e-12):
    """Pallas equivalent of BackbonePairEmbeddingExtraction.forward.

    Runs the (synthetic) backbone on all ligand and receptor tokens in a
    single fused kernel call and optionally L2-normalizes the embeddings.
    """
    v, h = emb_table.shape
    vp = _round_up(v, 128)
    hp = _round_up(h, 128)
    # TODO(synk): at real ESM hidden sizes pad hp to a multiple of 256 on
    # v6e/v7x (2x256^2 MXU) once the MXU becomes the binding slot.

    # Fold the projection into the embedding table (f32 accumulate), then
    # store bf16 and zero-pad to lane-aligned shapes (zeros do not change the
    # matmul, bias add, mask or the L2 norm).
    fused = jnp.dot(emb_table.astype(jnp.bfloat16), proj_w.astype(jnp.bfloat16),
                    preferred_element_type=jnp.float32)          # (V, H) f32
    fused_p = jnp.zeros((vp, hp), jnp.bfloat16).at[:v, :h].set(
        fused.astype(jnp.bfloat16))
    b_p = jnp.zeros((1, hp), jnp.float32).at[:, :h].set(
        jnp.asarray(proj_b, jnp.float32).reshape(1, -1))

    bl, sl = ligand_input_ids.shape
    br, sr = receptor_input_ids.shape
    if ligand_attention_mask is None:
        ligand_attention_mask = jnp.ones((bl, sl), jnp.int32)
    if receptor_attention_mask is None:
        receptor_attention_mask = jnp.ones((br, sr), jnp.int32)

    # Encode the attention mask as sentinel id -1 (no separate mask stream).
    # Contract: ids outside [0, V) produce a zero embedding row (not an error
    # like a torch gather); acceptable because such rows are mask=0 padding.
    lig_ids = jnp.where(ligand_attention_mask > 0,
                        ligand_input_ids, -1).astype(jnp.int32).reshape(-1)
    rec_ids = jnp.where(receptor_attention_mask > 0,
                        receptor_input_ids, -1).astype(jnp.int32).reshape(-1)

    n_lig = bl * sl
    n_rec = br * sr
    n_total = n_lig + n_rec

    # Tile selection: big tiles, but ensure at least 2 grid steps so the
    # "parallel" axis shards across both v7x TensorCores even for tiny inputs.
    tile_req = max(128, _round_up(int(tile_m), 128))
    half = _round_up(max((n_total + 1) // 2, 1), 128)
    tile = min(tile_req, half)

    # Pad ligand and receptor row counts to tile boundaries independently so
    # the ligand/receptor split falls on a tile boundary (>= 1 tile each).
    n_lig_pad = _round_up(max(n_lig, 1), tile)
    n_rec_pad = _round_up(max(n_rec, 1), tile)
    n_pad = n_lig_pad + n_rec_pad

    ids_all = jnp.full((n_pad,), -1, jnp.int32)
    ids_all = ids_all.at[:n_lig].set(lig_ids)
    ids_all = ids_all.at[n_lig_pad:n_lig_pad + n_rec].set(rec_ids)
    ids_col = ids_all[:, None]                                   # (n_pad, 1)

    out = _run_backbone_rows(ids_col, fused_p, b_p, normalize=normalize,
                             tile_m=tile, out_dtype=out_dtype, eps=eps)

    ligand_embed = out[:n_lig, :h].reshape(bl, sl, h)
    receptor_embed = out[n_lig_pad:n_lig_pad + n_rec, :h].reshape(br, sr, h)
    return ligand_embed, receptor_embed


# ---------------------------------------------------------------------------
# Pure-JAX reference (same synthetic backbone definition: bf16 fused table).
# ---------------------------------------------------------------------------
def _reference_single(ids, mask, emb_table, proj_w, proj_b, normalize,
                      eps=1e-12):
    fused = jnp.dot(emb_table.astype(jnp.bfloat16), proj_w.astype(jnp.bfloat16),
                    preferred_element_type=jnp.float32).astype(jnp.bfloat16)
    h = fused[ids].astype(jnp.float32)                     # (B, S, H)
    h = h + jnp.asarray(proj_b, jnp.float32).reshape(-1)
    h = h * mask[..., None].astype(jnp.float32)
    if normalize:
        sumsq = jnp.sum(h * h, axis=-1, keepdims=True)
        h = h * jax.lax.rsqrt(jnp.maximum(sumsq, eps * eps))
    return h


if __name__ == "__main__":
    # Small shapes consistent with the module: a ligand / receptor token pair.
    B, S_LIG, S_REC = 2, 8, 12
    V, H = 33, 128          # protein-alphabet-sized vocab, lane-aligned hidden

    key = jax.random.PRNGKey(0)
    k_lig, k_rec, k_emb, k_w, k_b = jax.random.split(key, 5)

    ligand_ids = jax.random.randint(k_lig, (B, S_LIG), 0, V, dtype=jnp.int32)
    receptor_ids = jax.random.randint(k_rec, (B, S_REC), 0, V, dtype=jnp.int32)

    ligand_mask = jnp.ones((B, S_LIG), jnp.int32).at[1, -2:].set(0)
    receptor_mask = jnp.ones((B, S_REC), jnp.int32).at[0, -3:].set(0)

    emb_table = (jax.random.normal(k_emb, (V, H), jnp.float32) * 0.02
                 ).astype(jnp.bfloat16)
    proj_w = (jax.random.normal(k_w, (H, H), jnp.float32) * 0.1
              ).astype(jnp.bfloat16)
    proj_b = jax.random.normal(k_b, (1, H), jnp.float32) * 0.01

    ok = True
    for normalize in (False, True):
        lig_out, rec_out = backbone_pair_embedding_extraction(
            ligand_ids, receptor_ids, ligand_mask, receptor_mask,
            emb_table=emb_table, proj_w=proj_w, proj_b=proj_b,
            normalize=normalize, tile_m=1024, out_dtype=jnp.float32)
        lig_out = jax.block_until_ready(lig_out)
        rec_out = jax.block_until_ready(rec_out)

        lig_ref = _reference_single(ligand_ids, ligand_mask,
                                    emb_table, proj_w, proj_b, normalize)
        rec_ref = _reference_single(receptor_ids, receptor_mask,
                                    emb_table, proj_w, proj_b, normalize)

        assert lig_out.shape == (B, S_LIG, H), lig_out.shape
        assert rec_out.shape == (B, S_REC, H), rec_out.shape
        ok &= bool(jnp.allclose(lig_out, lig_ref, atol=1e-4, rtol=1e-4))
        ok &= bool(jnp.allclose(rec_out, rec_ref, atol=1e-4, rtol=1e-4))

    # Exercise the bf16-output path (halved writeback traffic); looser
    # tolerance accounts for the final bf16 store rounding.
    lig_bf, rec_bf = backbone_pair_embedding_extraction(
        ligand_ids, receptor_ids, ligand_mask, receptor_mask,
        emb_table=emb_table, proj_w=proj_w, proj_b=proj_b,
        normalize=True, tile_m=1024, out_dtype=jnp.bfloat16)
    lig_bf = jax.block_until_ready(lig_bf)
    rec_bf = jax.block_until_ready(rec_bf)
    assert lig_bf.dtype == jnp.bfloat16 and rec_bf.dtype == jnp.bfloat16
    lig_ref_n = _reference_single(ligand_ids, ligand_mask,
                                  emb_table, proj_w, proj_b, True)
    rec_ref_n = _reference_single(receptor_ids, receptor_mask,
                                  emb_table, proj_w, proj_b, True)
    ok &= bool(jnp.allclose(lig_bf.astype(jnp.float32), lig_ref_n,
                            atol=2e-2, rtol=2e-2))
    ok &= bool(jnp.allclose(rec_bf.astype(jnp.float32), rec_ref_n,
                            atol=2e-2, rtol=2e-2))

    assert ok, "mismatch vs reference"
    print("KERNEL_OK")
</pallas_src>

<mosaic_0001>
module attributes {stable_mosaic.version = 11 : i64} {
  func.func @_backbone_rows_kernel(%arg0: i32, %arg1: memref<128x1xi32, #tpu.memory_space<vmem>>, %arg2: memref<128x128xbf16, #tpu.memory_space<vmem>>, %arg3: memref<1x128xf32, #tpu.memory_space<vmem>>, %arg4: memref<128x128xf32, #tpu.memory_space<vmem>>) attributes {dimension_semantics = [#tpu.dimension_semantics<parallel>], iteration_bounds = array<i64: 2>, scalar_prefetch = 0 : i64, scratch_operands = 0 : i64, tpu.core_type = #tpu.core_type<tc>, window_params = [{transform_indices = @transform_0, window_bounds = array<i64: 128, 1>}, {pipeline_mode = #tpu.pipeline_mode<synchronous>, transform_indices = @transform_1, window_bounds = array<i64: 128, 128>}, {pipeline_mode = #tpu.pipeline_mode<synchronous>, transform_indices = @transform_2, window_bounds = array<i64: 1, 128>}, {transform_indices = @transform_3, window_bounds = array<i64: 128, 128>}]} {
    %c0 = arith.constant 0 : index
    %c0_0 = arith.constant 0 : index
    %0 = vector.load %arg1[%c0, %c0_0] : memref<128x1xi32, #tpu.memory_space<vmem>>, vector<128x1xi32>
    %c0_i32 = arith.constant 0 : i32
    %1 = vector.broadcast %c0_i32 : i32 to vector<128x1xi32>
    %2 = arith.cmpi sge, %0, %1 : vector<128x1xi32>
    %3 = arith.extui %2 : vector<128x1xi1> to vector<128x1xi32>
    %4 = arith.sitofp %3 : vector<128x1xi32> to vector<128x1xf32>
    %5 = tpu.iota {dimensions = array<i32: 1>} : vector<128x128xi32>
    %6 = vector.broadcast %0 : vector<128x1xi32> to vector<128x128xi32>
    %7 = arith.cmpi eq, %6, %5 : vector<128x128xi32>
    %8 = arith.extui %7 : vector<128x128xi1> to vector<128x128xi32>
    %9 = arith.sitofp %8 : vector<128x128xi32> to vector<128x128xf32>
    %10 = arith.truncf %9 : vector<128x128xf32> to vector<128x128xbf16>
    %c0_1 = arith.constant 0 : index
    %c0_2 = arith.constant 0 : index
    %11 = vector.load %arg2[%c0_1, %c0_2] : memref<128x128xbf16, #tpu.memory_space<vmem>>, vector<128x128xbf16>
    %cst = arith.constant dense<0.000000e+00> : vector<128x128xf32>
    %12 = tpu.matmul %10, %11, %cst {dimension_numbers = #tpu.dot_dimension_numbers<[1], [0], [0], [1], [0, 0, 1, 1], [], []>} : vector<128x128xbf16>, vector<128x128xbf16>, vector<128x128xf32> -> vector<128x128xf32>
    %c0_3 = arith.constant 0 : index
    %c0_4 = arith.constant 0 : index
    %13 = vector.load %arg3[%c0_3, %c0_4] : memref<1x128xf32, #tpu.memory_space<vmem>>, vector<1x128xf32>
    %14 = vector.broadcast %13 : vector<1x128xf32> to vector<128x128xf32>
    %15 = arith.addf %12, %14 : vector<128x128xf32>
    %16 = vector.broadcast %4 : vector<128x1xf32> to vector<128x128xf32>
    %17 = arith.mulf %15, %16 : vector<128x128xf32>
    %c0_5 = arith.constant 0 : index
    %c0_6 = arith.constant 0 : index
    %18 = vector.load %arg4[%c0_5, %c0_6] : memref<128x128xf32, #tpu.memory_space<vmem>>, vector<128x128xf32>
    tpu.vector_store %arg4[%c0_5, %c0_6], %17 {strides = array<i32>} : memref<128x128xf32, #tpu.memory_space<vmem>>, vector<128x128xf32>,
    return
  }
  func.func @transform_0(%arg0: i32) -> (i32, i32) {
    %c0_i32 = arith.constant 0 : i32
    %c0_i32_0 = arith.constant 0 : i32
    return %arg0, %c0_i32 : i32, i32
  }
  func.func @transform_1(%arg0: i32) -> (i32, i32) {
    %c0_i32 = arith.constant 0 : i32
    %c0_i32_0 = arith.constant 0 : i32
    %c0_i32_1 = arith.constant 0 : i32
    return %c0_i32, %c0_i32_0 : i32, i32
  }
  func.func @transform_2(%arg0: i32) -> (i32, i32) {
    %c0_i32 = arith.constant 0 : i32
    %c0_i32_0 = arith.constant 0 : i32
    %c0_i32_1 = arith.constant 0 : i32
    return %c0_i32, %c0_i32_0 : i32, i32
  }
  func.func @transform_3(%arg0: i32) -> (i32, i32) {
    %c0_i32 = arith.constant 0 : i32
    %c0_i32_0 = arith.constant 0 : i32
    return %arg0, %c0_i32 : i32, i32
  }
}

</mosaic_0001>

<bundles_post_ra>
// kernel: tpu_custom_call.1
= control target key start
LH: loop header
LB: loop body
LE: loop exit
PB: predicated region body
PF: predicated region fallthrough
CT: control target
= control target key end

     0   :  { %8 = vsyncpa [#allocation3], 0  ;;  %s1233_s0 = inlined_call_operand.vmem [shape: s32[256,1], index: 0, kind: input, shape index: {}]   ;;  %s1234_s1 = inlined_call_operand.vmem [shape: bf16[128,128], index: 1, kind: input, shape index: {}]   ;;  %s1235_s2 = inlined_call_operand.vmem [shape: f32[1,128], index: 2, kind: input, shape index: {}]   ;;  %s1236_s3 = inlined_call_operand.hbm [shape: f32[256,128], index: 3, kind: output, shape index: {}]  }
   0x1   :  { %10 = vsyncpa [#allocation3 + $0x1], 0  ;;  %s1017_s12 = smov 0   ;;  %s1019_s13 = smov 0  }
   0x2   :  { %s1021_s14 = smov 0   ;;  %s1023_s15 = smov 0  }
   0x3 LB: > { %s1038_s16 = sadd.s32 4294967295, %s989_s15   ;;  %s699_s17 = sadd.s32 4294967294, %s989_s15   ;;  %s989_s15 = sphi %s1023_s15, %s1242_s15   ;;  %s985_s14 = sphi %s1021_s14, %s1241_s14   ;;  %s981_s13 = sphi %s1019_s13, %s1240_s13   ;;  %s977_s12 = sphi %s1017_s12, %s1239_s12  }
   0x4   : > { %s1042_s18 = sadd.s32 1, %s989_s15   ;;  %s91_s19 = sadd.s32 1, %s985_s14 }
   0x5   : > { %s88_s20 = ssub.s32 %s989_s15, %s1042_s18  ;;  %p101_p0 = scmp.ne.s32.totalorder %s985_s14, %s981_s13 }
   0x6   : > { %p89_p1 = scmp.eq.s32.totalorder %s88_s20, 0  ;;  %p102_p2 = scmp.eq.s32.totalorder %s1038_s16, 1 }
   0x7   : > { %p107_p3 = scmp.ne.s32.totalorder %s981_s13, %s977_s12  ;;  %p108_p4 = scmp.eq.s32.totalorder %s699_s17, 1 }
   0x8   : > { %s1053_s21 = scalar_select %p89_p1, %s985_s14, %s91_s19  }
   0x9   : > { %p1055_p5 = por %p102_p2, %p101_p0  ;;  %p1059_p6 = por %p108_p4, %p107_p3 }
   0xa   : > { %p702_p7 = scmp.ge.s32.totalorder %s989_s15, 1  ;;  %p141_p8 = scmp.lt.s32.totalorder %s989_s15, 3 }
   0xc   : > { %p142_p9 = pnand %p702_p7, %p141_p8 }
   0xd   : > { %s704_s24 = sshll.u32 (!%p142_p9), %s1038_s16, 4  ;;  %v919_v0 = vld [vmem:[%s1234_s1] sm:$0xff] (!%p142_p9)   ;;  %v991_v1 = vmov (!%p142_p9), 0   ;;  %v920_v2 = vld [vmem:[%s1234_s1 + $0x8] sm:$0xff] (!%p142_p9)   ;;  %v921_v3 = vld [vmem:[%s1234_s1 + $0x10] sm:$0xff] (!%p142_p9)   ;;  %v992_v23 = vmov (!%p142_p9), 0.0   ;;  %v237_v50 = vlaneseq (!%p142_p9) }
   0xe   : > { %145 = sbr.rel (%p142_p9) target bundleno = 418 (0x1a2), region = 32  ;;  %878 = vset.pattern.permute.xlu1 (!%p142_p9), %v991_v1  ;;  %877 = vset.pattern.permute.xlu0 (!%p142_p9), %v991_v1  ;;  %p166_p10 = scmp.lt.s32.totalorder (!%p142_p9), %s704_s24, 31  ;;  %v922_v8 = vld [vmem:[%s1234_s1 + $0x18] sm:$0xff] (!%p142_p9)   ;;  %v923_v11 = vld [vmem:[%s1234_s1 + $0x20] sm:$0xff] (!%p142_p9)   ;;  %v924_v14 = vld [vmem:[%s1234_s1 + $0x28] sm:$0xff] (!%p142_p9)  }
   0xf   : > { %785 = vmatprep.subr.bf16.mxu0 (!%p142_p9), %v919_v0  ;;  %817 = vmatprep.subr.bf16.mxu1 (!%p142_p9), %v919_v0  ;;  %v925_v17 = vld [vmem:[%s1234_s1 + $0x30] sm:$0xff] (!%p142_p9)   ;;  %v926_v20 = vld [vmem:[%s1234_s1 + $0x38] sm:$0xff] (!%p142_p9)   ;;  %v238_v53 = vand.u32 (!%p142_p9), 127, %v237_v50  ;;  %v993_v56 = vmov (!%p142_p9), 1.0|1.0   ;;  %s162_s27 = sand.u32 (!%p142_p9), 1, %s981_s13  }
  0x10   : > { %786 = vmatpush3.bf16.msra.mxu0 (!%p142_p9), %v919_v0  ;;  %825 = vmatpush3.bf16.msra.mxu1 (!%p142_p9), %v919_v0  ;;  %s703_s30 = sshll.u32 (!%p142_p9), %s162_s27, 7  ;;  %s768_s5 = sshll.u32 (!%p142_p9), %s1038_s16, 11 }
  0x11   : > { %787 = vmatprep.subr.bf16.mxu0 (!%p142_p9), %v920_v2  ;;  %818 = vmatprep.subr.bf16.mxu1 (!%p142_p9), %v920_v2  ;;  %s1147_s4 = scalar_lea.vmem (!%p142_p9), [#allocation2], %s703_s30  ;;  %s1183_s8 = scalar_lea.hbm (!%p142_p9), %s1236_s3, %s768_s5 }
  0x12   : > { %s637_s6 = sshll.u32 (!%p142_p9), %s1147_s4, 4  ;;  %s1192_s9 = scalar_lea.sflag (!%p142_p9), [#allocation3], %s162_s27  ;;  %s1185_s6 = int_to_ptr.vmem [resolvable:$true] %s637_s6 }
  0x13   : > { %s927_s10 = scalar_lea.vmem (!%p142_p9), %s1185_s6, 2048  ;;  %s994_s11 = smov (!%p142_p9), [#allocation2]  }
  0x14   : > { %788 = vmatpush3.bf16.msra.mxu0 (!%p142_p9), %v920_v2  ;;  %826 = vmatpush3.bf16.msra.mxu1 (!%p142_p9), %v920_v2  ;;  %p928_p11 = scmp.ne.s32.totalorder (!%p142_p9), %s1185_s6, %s927_s10  ;;  %s931_s17 = sshll.u32 (!%p142_p9), %s994_s11, 4  ;;  %s932_s17 = int_to_ptr.vmem [resolvable:$false] %s931_s17 }
  0x15   : > { %s1244_s24 = smov (!%p166_p10, %s704_s24), 31  ;;  %789 = vmatprep.subr.bf16.mxu0 %v921_v3  ;;  %819 = vmatprep.subr.bf16.mxu1 %v921_v3  ;;  %s933_s19 = scalar_lea.vmem %s932_s17, 4096 }
  0x16   : > { %s705_s29 = sshll.u32 %s1244_s24, 3  ;;  %p929_p12 = pnand %p928_p11, %p1055_p5 }
  0x17   : > { %s1078_s7 = scalar_lea.vmem %s1233_s0, %s705_s29  ;;  %p934_p0 = scmp.lt.s32.totalorder %s1185_s6, %s932_s17 }
  0x18   : > { %v1081_v4 = vld [vmem:[%s1078_s7 + $0x40] sm:$0xff]  ;;  %v1089_v6 = vld [vmem:[%s1078_s7 + $0x48] sm:$0xff]  ;;  %790 = vmatpush3.bf16.msra.mxu0 %v921_v3  ;;  %827 = vmatpush3.bf16.msra.mxu1 %v921_v3  ;;  %v176_v9 = vld [vmem:[%s1078_s7 + $0x18] sm:$0xff]  ;;  %p930_p13 = pneg %p929_p12  ;;  %p935_p1 = scmp.lt.s32.totalorder %s933_s19, %s927_s10 }
  0x19   : > { %v1084_v5 = vld [vmem:[%s1078_s7] sm:$0xff]  ;;  %264 = vperm.xlu1 %878, %v1081_v4   ;;  %v174_v7 = vld [vmem:[%s1078_s7 + $0x8] sm:$0xff]  ;;  %v175_v10 = vld [vmem:[%s1078_s7 + $0x10] sm:$0xff]  ;;  %791 = vmatprep.subr.bf16.mxu0 %v922_v8  ;;  %vm192_vm2 = vcmp.ge.s32.totalorder %v176_v9, 0  ;;  %vm197_vm8 = vcmp.ge.s32.totalorder %v1081_v4, 0  ;;  %vm198_vm9 = vcmp.ge.s32.totalorder %v1089_v6, 0 }
  0x1a   : > { %240 = vperm.xlu0 %877, %v1084_v5   ;;  %820 = vmatprep.subr.bf16.mxu1 %v922_v8  ;;  %v1102_v12 = vld [vmem:[%s1078_s7 + $0x58] sm:$0xff]  ;;  %v1105_v13 = vld [vmem:[%s1078_s7 + $0x50] sm:$0xff]  ;;  %v178_v15 = vld [vmem:[%s1078_s7 + $0x28] sm:$0xff]  ;;  %vm189_vm0 = vcmp.ge.s32.totalorder %v1084_v5, 0  ;;  %vm190_vm1 = vcmp.ge.s32.totalorder %v174_v7, 0  ;;  %vm191_vm3 = vcmp.ge.s32.totalorder %v175_v10, 0  ;;  %p936_p2 = por %p935_p1, %p934_p0 }
  0x1b   : > { %v177_v16 = vld [vmem:[%s1078_s7 + $0x20] sm:$0xff]  ;;  %v186_v18 = vld [vmem:[%s1078_s7 + $0x68] sm:$0xff]  ;;  %v180_v21 = vld [vmem:[%s1078_s7 + $0x38] sm:$0xff]  ;;  %v706_v24 = vsel %vm189_vm0, 1.0, %v992_v23  ;;  %v707_v25 = vsel %vm190_vm1, 1.0, %v992_v23  ;;  %v709_v26 = vsel %vm192_vm2, 1.0, %v992_v23 }
  0x1c   : > { %792 = vmatpush3.bf16.msra.mxu0 %v922_v8  ;;  %828 = vmatpush3.bf16.msra.mxu1 %v922_v8  ;;  %v185_v19 = vld [vmem:[%s1078_s7 + $0x60] sm:$0xff]  ;;  %v179_v22 = vld [vmem:[%s1078_s7 + $0x30] sm:$0xff]  ;;  %v708_v27 = vsel %vm191_vm3, 1.0, %v992_v23  ;;  %v188_v28 = vld [vmem:[%s1078_s7 + $0x78] sm:$0xff]  ;;  %vm194_vm4 = vcmp.ge.s32.totalorder %v178_v15, 0  ;;  %vm193_vm5 = vcmp.ge.s32.totalorder %v177_v16, 0  ;;  %v879_v31 = vpack.i.bf16 %v707_v25, %v706_v24  ;;  %p937_p3 = pnand %p936_p2, %p930_p13 }
  0x1d   : > { %267 = vperm.xlu1 %878, %v1089_v6   ;;  %793 = vmatprep.subr.bf16.mxu0 %v923_v11  ;;  %v187_v29 = vld [vmem:[%s1078_s7 + $0x70] sm:$0xff]  ;;  %vm196_vm6 = vcmp.ge.s32.totalorder %v180_v21, 0  ;;  %vm195_vm7 = vcmp.ge.s32.totalorder %v179_v22, 0  ;;  %v884_v30 = vpack.i.bf16 %v709_v26, %v708_v27  ;;  %v711_v32 = vsel %vm194_vm4, 1.0, %v992_v23 }
  0x1e   : > { %243 = vperm.xlu0 %877, %v174_v7   ;;  %821 = vmatprep.subr.bf16.mxu1 %v923_v11  ;;  %v710_v33 = vsel %vm193_vm5, 1.0, %v992_v23  ;;  %v713_v34 = vsel %vm196_vm6, 1.0, %v992_v23  ;;  %v712_v35 = vsel %vm195_vm7, 1.0, %v992_v23  ;;  %vm200_vm10 = vcmp.ge.s32.totalorder %v1102_v12, 0 }
  0x1f   : > { %vm199_vm11 = vcmp.ge.s32.totalorder %v1105_v13, 0  ;;  %v894_v36 = vpack.i.bf16 %v713_v34, %v712_v35  ;;  %v889_v37 = vpack.i.bf16 %v711_v32, %v710_v33  ;;  %v714_v38 = vsel %vm197_vm8, 1.0, %v992_v23 }
  0x20   : > { %794 = vmatpush3.bf16.msra.mxu0 %v923_v11  ;;  %829 = vmatpush3.bf16.msra.mxu1 %v923_v11  ;;  %v715_v39 = vsel %vm198_vm9, 1.0, %v992_v23  ;;  %v717_v40 = vsel %vm200_vm10, 1.0, %v992_v23  ;;  %v716_v41 = vsel %vm199_vm11, 1.0, %v992_v23  ;;  %vm202_vm12 = vcmp.ge.s32.totalorder %v186_v18, 0 }
  0x21   : > { %249 = vperm.xlu1 %878, %v176_v9   ;;  %795 = vmatprep.subr.bf16.mxu0 %v924_v14  ;;  %vm201_vm13 = vcmp.ge.s32.totalorder %v185_v19, 0  ;;  %vm204_vm14 = vcmp.ge.s32.totalorder %v188_v28, 0  ;;  %vm203_vm15 = vcmp.ge.s32.totalorder %v187_v29, 0  ;;  %v904_v42 = vpack.i.bf16 %v717_v40, %v716_v41  ;;  %v1139_v9 = vld [vmem:[%s1235_s2] ss:$0 sm:$0xff] }
  0x22   : > { %246 = vperm.xlu0 %877, %v175_v10   ;;  %822 = vmatprep.subr.bf16.mxu1 %v924_v14  ;;  %v899_v43 = vpack.i.bf16 %v715_v39, %v714_v38  ;;  %v719_v44 = vsel %vm202_vm12, 1.0, %v992_v23  ;;  %v718_v45 = vsel %vm201_vm13, 1.0, %v992_v23  ;;  %v721_v46 = vsel %vm204_vm14, 1.0, %v992_v23 }
  0x23   : > { %v720_v47 = vsel %vm203_vm15, 1.0, %v992_v23  ;;  %v909_v49 = vpack.i.bf16 %v719_v44, %v718_v45 }
  0x24   : > { %796 = vmatpush3.bf16.msra.mxu0 %v924_v14  ;;  %830 = vmatpush3.bf16.msra.mxu1 %v924_v14  ;;  %v914_v48 = vpack.i.bf16 %v721_v46, %v720_v47 }
  0x25   : > { %273 = vperm.xlu1 %878, %v1102_v12   ;;  %797 = vmatprep.subr.bf16.mxu0 %v925_v17 }
  0x26   : > { %270 = vperm.xlu0 %877, %v1105_v13   ;;  %823 = vmatprep.subr.bf16.mxu1 %v925_v17 }
  0x28   : > { %798 = vmatpush3.bf16.msra.mxu0 %v925_v17  ;;  %831 = vmatpush3.bf16.msra.mxu1 %v925_v17 }
  0x29   : > { %255 = vperm.xlu1 %878, %v178_v15   ;;  %799 = vmatprep.subr.bf16.mxu0 %v926_v20 }
  0x2a   : > { %252 = vperm.xlu0 %877, %v177_v16   ;;  %824 = vmatprep.subr.bf16.mxu1 %v926_v20 }
  0x2c   : > { %800 = vmatpush3.bf16.msra.mxu0 %v926_v20  ;;  %832 = vmatpush3.bf16.msra.mxu1 %v926_v20 }
  0x2d   : > { %279 = vperm.xlu1 %878, %v186_v18  }
  0x2e   : > { %276 = vperm.xlu0 %877, %v185_v19  }
  0x31   : > { %261 = vperm.xlu1 %878, %v180_v21  }
  0x32   : > { %258 = vperm.xlu0 %877, %v179_v22  }
  0x35   : > { %285 = vperm.xlu1 %878, %v188_v28  }
  0x36   : > { %282 = vperm.xlu0 %877, %v187_v29  }
  0x39   : > { %885 = vperm.xlu1 %878, %v884_v30  }
  0x3a   : > { %880 = vperm.xlu0 %877, %v879_v31  }
  0x3d   : > { %895 = vperm.xlu1 %878, %v894_v36  }
  0x3e   : > { %890 = vperm.xlu0 %877, %v889_v37  }
  0x41   : > { %905 = vperm.xlu1 %878, %v904_v42  }
  0x42   : > { %900 = vperm.xlu0 %877, %v899_v43  }
  0x45   : > { %915 = vperm.xlu1 %878, %v914_v48  }
  0x46   : > { %910 = vperm.xlu0 %877, %v909_v49  }
  0x98   : > { %v265_v51 = vpop.permute.xlu1 %264 }
  0x99   : > { %v241_v52 = vpop.permute.xlu0 %240  ;;  %vm295_vm3 = vcmp.eq.s32.totalorder %v265_v51, %v238_v53 }
  0x9a   : > { %vm287_vm0 = vcmp.eq.s32.totalorder %v241_v52, %v238_v53 }
  0x9c   : > { %v268_v54 = vpop.permute.xlu1 %267 }
  0x9d   : > { %v244_v55 = vpop.permute.xlu0 %243  ;;  %vm296_vm1 = vcmp.eq.s32.totalorder %v268_v54, %v238_v53 }
  0x9e   : > { %vm288_vm2 = vcmp.eq.s32.totalorder %v244_v55, %v238_v53  ;;  %vm755_vm5 = vmpackc.low %vm296_vm1, %vm295_vm3 }
  0x9f   : > { %vm747_vm4 = vmpackc.low %vm288_vm2, %vm287_vm0  ;;  %809 = vmatprep.mubr.msk.bf16.mxu1 %vm755_vm5, %v993_v56 }
  0xa0   : > { %801 = vmatprep.mubr.msk.bf16.mxu0 %vm747_vm4, %v993_v56  ;;  %v250_v57 = vpop.permute.xlu1 %249 }
  0xa1   : > { %v247_v58 = vpop.permute.xlu0 %246  ;;  %vm290_vm6 = vcmp.eq.s32.totalorder %v250_v57, %v238_v53 }
  0xa2   : > { %vm289_vm7 = vcmp.eq.s32.totalorder %v247_v58, %v238_v53 }
  0xa3   : > { %vm749_vm8 = vmpackc.low %vm290_vm6, %vm289_vm7 }
  0xa4   : > { %802 = vmatmul.mubr.msk.bf16.vlgmr.msra.gmra.mrb[0].mxu0 %vm749_vm8, %v993_v56  ;;  %v274_v59 = vpop.permute.xlu1 %273 }
  0xa5   : > { %v271_v60 = vpop.permute.xlu0 %270  ;;  %vm298_vm9 = vcmp.eq.s32.totalorder %v274_v59, %v238_v53 }
  0xa6   : > { %vm297_vm10 = vcmp.eq.s32.totalorder %v271_v60, %v238_v53 }
  0xa7   : > { %vm757_vm11 = vmpackc.low %vm298_vm9, %vm297_vm10 }
  0xa8   : > { %810 = vmatmul.mubr.msk.bf16.vlgmr.msra.gmra.mrb[0].mxu1 %vm757_vm11, %v993_v56  ;;  %v256_v61 = vpop.permute.xlu1 %255 }
  0xa9   : > { %v253_v62 = vpop.permute.xlu0 %252  ;;  %vm292_vm12 = vcmp.eq.s32.totalorder %v256_v61, %v238_v53 }
  0xaa   : > { %vm291_vm13 = vcmp.eq.s32.totalorder %v253_v62, %v238_v53 }
  0xab   : > { %vm751_vm14 = vmpackc.low %vm292_vm12, %vm291_vm13 }
  0xac   : > { %805 = vmatprep.mubr.msk.bf16.mxu0 %vm751_vm14, %v993_v56  ;;  %v280_v63 = vpop.permute.xlu1 %279 }
  0xad   : > { %v277_v0 = vpop.permute.xlu0 %276  ;;  %vm300_vm15 = vcmp.eq.s32.totalorder %v280_v63, %v238_v53 }
  0xae   : > { %vm299_vm0 = vcmp.eq.s32.totalorder %v277_v0, %v238_v53 }
  0xaf   : > { %vm759_vm1 = vmpackc.low %vm300_vm15, %vm299_vm0 }
  0xb0   : > { %813 = vmatprep.mubr.msk.bf16.mxu1 %vm759_vm1, %v993_v56  ;;  %v262_v1 = vpop.permute.xlu1 %261 }
  0xb1   : > { %v259_v2 = vpop.permute.xlu0 %258  ;;  %vm294_vm2 = vcmp.eq.s32.totalorder %v262_v1, %v238_v53 }
  0xb2   : > { %vm293_vm3 = vcmp.eq.s32.totalorder %v259_v2, %v238_v53 }
  0xb3   : > { %vm753_vm4 = vmpackc.low %vm294_vm2, %vm293_vm3 }
  0xb4   : > { %806 = vmatmul.mubr.msk.bf16.gmra.mrb[4].mxu0 %vm753_vm4, %v993_v56  ;;  %v286_v3 = vpop.permute.xlu1 %285 }
  0xb5   : > { %v283_v4 = vpop.permute.xlu0 %282  ;;  %vm302_vm5 = vcmp.eq.s32.totalorder %v286_v3, %v238_v53 }
  0xb6   : > { %vm301_vm6 = vcmp.eq.s32.totalorder %v283_v4, %v238_v53 }
  0xb7   : > { %vm761_vm7 = vmpackc.low %vm302_vm5, %vm301_vm6 }
  0xb8   : > { %814 = vmatmul.mubr.msk.bf16.gmra.mrb[4].mxu1 %vm761_vm7, %v993_v56  ;;  %v886_v5 = vpop.permute.xlu1 %885 }
  0xb9   : > { %v881_v6 = vpop.permute.xlu0 %880  ;;  %v887_v11 = vunpack.i.l.bf16 %v886_v5  ;;  %v888_v18 = vunpack.i.h.bf16 %v886_v5 }
  0xba   : > { %v882_v14 = vunpack.i.l.bf16 %v881_v6  ;;  %v883_v23 = vunpack.i.h.bf16 %v881_v6 }
  0xbc   : > { %v1131_v7 = vpop.permute.xlu1 %895 }
  0xbd   : > { %v1134_v8 = vpop.permute.xlu0 %890  ;;  %v897_v45 = vunpack.i.l.bf16 %v1131_v7  ;;  %v898_v52 = vunpack.i.h.bf16 %v1131_v7 }
  0xbe   : > { %v892_v48 = vunpack.i.l.bf16 %v1134_v8  ;;  %v893_v57 = vunpack.i.h.bf16 %v1134_v8 }
  0xc0   : > { %v906_v15 = vpop.permute.xlu1 %905 }
  0xc1   : > { %v901_v19 = vpop.permute.xlu0 %900  ;;  %v907_v27 = vunpack.i.l.bf16 %v906_v15  ;;  %v908_v35 = vunpack.i.h.bf16 %v906_v15 }
  0xc2   : > { %v902_v31 = vunpack.i.l.bf16 %v901_v19  ;;  %v903_v39 = vunpack.i.h.bf16 %v901_v19 }
  0xc4   : > { %v916_v49 = vpop.permute.xlu1 %915 }
  0xc5   : > { %v911_v53 = vpop.permute.xlu0 %910  ;;  %v917_v61 = vunpack.i.l.bf16 %v916_v49  ;;  %v918_v5 = vunpack.i.h.bf16 %v916_v49 }
  0xc6   : > { %v912_v1 = vunpack.i.l.bf16 %v911_v53 }
 0x177   : > { %v803_v10 = vpop.f32.mrb[0].mxu0 }
 0x178   : > { %v457_v12 = vadd.f32 %v803_v10, %v1139_v9  ;;  %v448_v13 = vpop.f32.mrb[1].mxu0  ;;  %v913_v10 = vunpack.i.h.bf16 %v911_v53 }
 0x179   : > { %v449_v16 = vadd.f32 %v1139_v9, %v448_v13  ;;  %v804_v17 = vpop.f32.mrb[2].mxu0 }
 0x17a   : > { %v593_v20 = vmul.f32 %v887_v11, %v457_v12  ;;  %v460_v21 = vadd.f32 %v804_v17, %v1139_v9  ;;  %v451_v22 = vpop.f32.mrb[3].mxu0 }
 0x17b   : > { %v591_v24 = vmul.f32 %v882_v14, %v449_v16  ;;  %v452_v25 = vadd.f32 %v1139_v9, %v451_v22  ;;  %v811_v26 = vpop.f32.mrb[0].mxu1 }
 0x17c   : > { %609 = vst [vmem:[%s1147_s4 + $0x10] sm:$0xff] %v593_v20  ;;  %v594_v28 = vmul.f32 %v888_v18, %v460_v21  ;;  %v489_v29 = vadd.f32 %v811_v26, %v1139_v9  ;;  %v480_v30 = vpop.f32.mrb[1].mxu1 }
 0x17d   : > { %607 = vst [vmem:[%s1147_s4] sm:$0xff] %v591_v24  ;;  %v592_v32 = vmul.f32 %v883_v23, %v452_v25  ;;  %v481_v33 = vadd.f32 %v1139_v9, %v480_v30  ;;  %v812_v34 = vpop.f32.mrb[2].mxu1 }
 0x17e   : > { %610 = vst [vmem:[%s1147_s4 + $0x18] sm:$0xff] %v594_v28  ;;  %v601_v36 = vmul.f32 %v907_v27, %v489_v29  ;;  %v492_v37 = vadd.f32 %v812_v34, %v1139_v9  ;;  %v483_v38 = vpop.f32.mrb[3].mxu1 }
 0x17f   : > { %608 = vst [vmem:[%s1147_s4 + $0x8] sm:$0xff] %v592_v32  ;;  %v599_v40 = vmul.f32 %v902_v31, %v481_v33  ;;  %v484_v41 = vadd.f32 %v1139_v9, %v483_v38 }
 0x180   : > { %617 = vst [vmem:[%s1147_s4 + $0x50] sm:$0xff] %v601_v36  ;;  %v602_v42 = vmul.f32 %v908_v35, %v492_v37 }
 0x181   : > { %615 = vst [vmem:[%s1147_s4 + $0x40] sm:$0xff] %v599_v40  ;;  %v600_v43 = vmul.f32 %v903_v39, %v484_v41 }
 0x182   : > { %618 = vst [vmem:[%s1147_s4 + $0x58] sm:$0xff] %v602_v42 }
 0x183   : > { %616 = vst [vmem:[%s1147_s4 + $0x48] sm:$0xff] %v600_v43 }
 0x187   : > { %v807_v44 = vpop.f32.mrb[4].mxu0 }
 0x188   : > { %v473_v46 = vadd.f32 %v807_v44, %v1139_v9  ;;  %v464_v47 = vpop.f32.mrb[5].mxu0 }
 0x189   : > { %v465_v50 = vadd.f32 %v1139_v9, %v464_v47  ;;  %v808_v51 = vpop.f32.mrb[6].mxu0 }
 0x18a   : > { %v597_v54 = vmul.f32 %v897_v45, %v473_v46  ;;  %v476_v55 = vadd.f32 %v808_v51, %v1139_v9  ;;  %v467_v56 = vpop.f32.mrb[7].mxu0 }
 0x18b   : > { %v595_v58 = vmul.f32 %v892_v48, %v465_v50  ;;  %v468_v59 = vadd.f32 %v1139_v9, %v467_v56  ;;  %v815_v60 = vpop.f32.mrb[4].mxu1 }
 0x18c   : > { %613 = vst [vmem:[%s1147_s4 + $0x30] sm:$0xff] %v597_v54  ;;  %v598_v62 = vmul.f32 %v898_v52, %v476_v55  ;;  %v505_v63 = vadd.f32 %v815_v60, %v1139_v9  ;;  %v496_v0 = vpop.f32.mrb[5].mxu1 }
 0x18d   : > { %611 = vst [vmem:[%s1147_s4 + $0x20] sm:$0xff] %v595_v58  ;;  %v596_v2 = vmul.f32 %v893_v57, %v468_v59  ;;  %v497_v3 = vadd.f32 %v1139_v9, %v496_v0  ;;  %v816_v4 = vpop.f32.mrb[6].mxu1 }
 0x18e   : > { %614 = vst [vmem:[%s1147_s4 + $0x38] sm:$0xff] %v598_v62  ;;  %v605_v6 = vmul.f32 %v917_v61, %v505_v63  ;;  %v508_v7 = vadd.f32 %v816_v4, %v1139_v9  ;;  %v499_v8 = vpop.f32.mrb[7].mxu1 }
 0x18f   : > { %612 = vst [vmem:[%s1147_s4 + $0x28] sm:$0xff] %v596_v2  ;;  %v603_v11 = vmul.f32 %v912_v1, %v497_v3  ;;  %v500_v12 = vadd.f32 %v1139_v9, %v499_v8 }
 0x190   : > { %621 = vst [vmem:[%s1147_s4 + $0x70] sm:$0xff] %v605_v6  ;;  %v606_v13 = vmul.f32 %v918_v5, %v508_v7 }
 0x191   : > { %619 = vst [vmem:[%s1147_s4 + $0x60] sm:$0xff] %v603_v11  ;;  %v604_v14 = vmul.f32 %v913_v10, %v500_v12 }
 0x192   : > { %622 = vst [vmem:[%s1147_s4 + $0x78] sm:$0xff] %v606_v13 }
 0x193   : > { %620 = vst [vmem:[%s1147_s4 + $0x68] sm:$0xff] %v604_v14 }
 0x194   : > { %940 = shalt.err (!%p937_p3)
}
 0x195   : > { %s941_s20 = scalar_lea.hbm %s1183_s8, 2048  ;;  %s945_s26 = scalar_lea.hbm %s1236_s3, 4096 }
 0x196   : > { %p942_p4 = scmp.ne.s32.totalorder %s1183_s8, %s941_s20  ;;  %p946_p9 = scmp.lt.u32.totalorder %s1183_s8, %s1236_s3 }
 0x197   : > { %p947_p10 = scmp.lt.u32.totalorder %s945_s26, %s941_s20  ;;  %p949_p12 = scmp.lt.u32.totalorder %s941_s20, %s1183_s8 }
 0x198   : > { %p943_p7 = pnand %p942_p4, %p1055_p5 }
 0x199   : > { %p948_p11 = por %p947_p10, %p946_p9 }
 0x19a   : > { %p944_p8 = pneg %p943_p7 }
 0x19b   : > { %p950_p13 = por %p949_p12, %p948_p11 }
 0x19d   : > { %p951_p0 = pnand %p950_p13, %p944_p8 }
 0x19f   : > { %954 = shalt.err (!%p951_p0)
}
 0x1a0   : > { %s995_s29 = smov 128   ;;  %s996_s30 = smov 8  }
 0x1a1   : > { %833 = dma.vmem_to_hbm [thread:$0]  (%p1055_p5), %s1185_s6, 2048, %s1183_s8, %s1192_s9, %s995_s29, %s995_s29, %s996_s30  }
 0x1a2 PF: > { %p839_p1 = scmp.ge.s32.totalorder %s989_s15, 2  ;;  %s652_s4 = sand.u32 1, %s977_s12  }
 0x1a3   : > { %s653_s5 = scalar_lea.sflag [#allocation3], %s652_s4 }
 0x1a4   : > { %p836_p2 = pnand %p839_p1, %p1059_p6 }
 0x1a6   : > { %972 = dma.done.wait (!%p836_p2), %s653_s5, 2048  }
 0x1a7   : > { %974 = vsyncadd (!%p836_p2), %s653_s5, 4294965248  ;;  %p13_p3 = scmp.ge.s32.totalorder %s1042_s18, 4   ;;  %s1239_s12 = smov %s981_s13 }
 0x1a8   : > { %s1240_s13 = smov %s985_s14  ;;  %s1241_s14 = smov %s1053_s21 }
 0x1a9   : > { %s1242_s15 = smov %s1042_s18  ;;  %15 = sbr.rel (!%p13_p3) target bundleno = 3 (0x3), region = 67 }
 0x1b0   :  { %658 = vsyncpa [#allocation3], 1 }
 0x1b1   :  { %660 = vsyncpa [#allocation3 + $0x1], 1 }

</bundles_post_ra>
